<compile_context>
chip_gen: v5e
topology: v5e:2x2
jax: 0.10.0
libtpu: 0.0.40
codegen_flags: <defaults>
</compile_context>

<pallas_src>
from functools import partial

import jax
import jax.numpy as jnp
from jax.experimental import pallas as pl
from jax.experimental.pallas import tpu as pltpu

_LANE = 128
_MAX_BLOCK_ROWS = 2048           # (2048,128) f32 tile = 1 MiB; ~86% HBM roofline.
                                 # (v6e could sweep to 4096; don't port that to v7x.)
_MIN_PALLAS_ELEMENTS = 1 << 20   # below this, XLA fusion beats kernel dispatch
_MAX_TABLE_STATES = 16           # where-chain is O(S) on the VALU; cap it
_VMEM_LIMIT_BYTES = 32 * 1024 * 1024


def _make_kernel(stochastic_refill, refill_probability, table_lookup,
                 num_equipment_states, return_increased):
    def kernel(*refs):
        it = iter(refs)
        bonus_ref = next(it)                       # SMEM table OR per-elem f32 tile
        supp_ref = next(it)
        cap_ref = next(it)
        equip_ref = next(it) if table_lookup else None
        refill_ref = next(it)
        rand_ref = next(it) if stochastic_refill else None
        out_supp_ref = next(it)
        out_mask_ref = next(it) if return_increased else None

        refilled = refill_ref[...]
        if refilled.dtype != jnp.bool_:
            refilled = refilled != 0
        if stochastic_refill:  # static config, baked at trace time
            refilled = jnp.logical_and(
                refilled,
                rand_ref[...].astype(jnp.float32) < jnp.float32(refill_probability))

        if table_lookup:
            # Tiny static SMEM table -> where-chain on the VPU (free filler under
            # the HBM bound for small S).  Equipment values outside
            # [0, num_equipment_states) map to bonus 0.0 (PyTorch indexing would
            # raise) -- documented divergence.
            equip = equip_ref[...].astype(jnp.int32)
            vals = [bonus_ref[s] for s in range(num_equipment_states)]  # hoisted
            bonus = jnp.where(equip == 0, vals[0], jnp.float32(0.0))
            for s in range(1, num_equipment_states):
                bonus = jnp.where(equip == s, vals[s], bonus)
        else:
            bonus = bonus_ref[...]

        new_supp = cap_ref[...].astype(jnp.float32) + bonus
        out_supp_ref[...] = jnp.where(
            refilled, new_supp,
            supp_ref[...].astype(jnp.float32)).astype(out_supp_ref.dtype)
        if return_increased:
            out_mask_ref[...] = refilled

    return kernel


def _reference(suppressants, capacity, equipment, refilled_suppressants,
               randomness_source, equipment_bonuses, stochastic_refill,
               refill_probability, return_increased):
    """Plain-XLA path (used for tiny problems)."""
    mask = refilled_suppressants.astype(jnp.bool_)
    if stochastic_refill:
        mask = jnp.logical_and(mask, randomness_source < refill_probability)
    bonus = equipment_bonuses.astype(jnp.float32)[equipment]
    new_supp = jnp.where(
        mask,
        (capacity.astype(jnp.float32) + bonus).astype(suppressants.dtype),
        suppressants)
    if return_increased:
        return new_supp, mask
    return new_supp


@partial(jax.jit,
         static_argnames=("stochastic_refill", "refill_probability",
                          "return_increased", "min_pallas_elements"))
def suppressant_refill(suppressants, capacity, equipment, refilled_suppressants,
                       randomness_source, equipment_bonuses, *,
                       stochastic_refill, refill_probability,
                       return_increased=False,
                       min_pallas_elements=_MIN_PALLAS_ELEMENTS):
    """Functional equivalent of SuppressantRefillTransition.forward."""
    B, A = suppressants.shape
    n = B * A
    num_states = int(equipment_bonuses.shape[0])
    supp_dtype = suppressants.dtype

    # Fast path: trivially fusible elementwise expression -> for small problems
    # kernel dispatch + layout plumbing dominate, plain XLA fusion is faster.
    if n < min_pallas_elements:
        return _reference(suppressants, capacity, equipment,
                          refilled_suppressants, randomness_source,
                          equipment_bonuses, stochastic_refill,
                          refill_probability, return_increased)

    table_lookup = num_states <= _MAX_TABLE_STATES

    rows = pl.cdiv(n, _LANE)
    padded = rows * _LANE
    needs_pad = padded != n
    # TODO(synk): handle the ragged tail in-kernel (masked store on the last
    # block) instead of padding; padding adds an extra HBM pass per stream.

    def lane_dense(x):
        x = x.reshape(-1)                    # free (contiguous row-major view)
        if needs_pad:
            x = jnp.pad(x, (0, padded - n))  # only when n % 128 != 0
        return x.reshape(rows, _LANE)

    # Largest tile that fits comfortably, but split into >= 2 grid steps when
    # possible so v7x's two TensorCores both get work on the parallel axis.
    half_rows = pl.cdiv(rows, 2)
    block_rows = min(_MAX_BLOCK_ROWS, max(8, ((half_rows + 7) // 8) * 8))
    grid = (pl.cdiv(rows, block_rows),)

    def tile():
        return pl.BlockSpec((block_rows, _LANE), lambda i: (i, 0))

    args, in_specs = [], []
    if table_lookup:
        args.append(equipment_bonuses.astype(jnp.float32))
        in_specs.append(pl.BlockSpec(memory_space=pltpu.MemorySpace.SMEM))
    else:
        # Large table: gather once in the wrapper, stream per-element bonus.
        args.append(lane_dense(equipment_bonuses.astype(jnp.float32)[equipment]))
        in_specs.append(tile())

    supp_arg_idx = len(args)
    args.append(lane_dense(suppressants));           in_specs.append(tile())
    args.append(lane_dense(capacity));               in_specs.append(tile())
    if table_lookup:
        args.append(lane_dense(equipment));          in_specs.append(tile())
    args.append(lane_dense(refilled_suppressants));  in_specs.append(tile())
    if stochastic_refill:
        args.append(lane_dense(randomness_source));  in_specs.append(tile())
    # TODO(synk): randomness could be drawn in-kernel (pltpu.prng_seed +
    # pltpu.prng_random_bits) to drop this HBM stream (~20% of traffic); kept
    # the explicit randomness_source for exact parity with the module.

    out_shape = [jax.ShapeDtypeStruct((rows, _LANE), supp_dtype)]
    out_specs = [tile()]
    if return_increased:
        out_shape.append(jax.ShapeDtypeStruct((rows, _LANE), jnp.bool_))
        out_specs.append(tile())

    kernel = _make_kernel(bool(stochastic_refill), float(refill_probability),
                          table_lookup, num_states, bool(return_increased))

    # Alias suppressants -> output only when the aliased input is a fresh
    # padded copy; aliasing the raw (non-donated) jit parameter would force
    # XLA to insert a defensive copy, costing more than the output alloc.
    io_aliases = {supp_arg_idx: 0} if needs_pad else {}

    outs = pl.pallas_call(
        kernel,
        out_shape=tuple(out_shape),
        grid=grid,
        in_specs=in_specs,
        out_specs=tuple(out_specs),
        input_output_aliases=io_aliases,
        compiler_params=pltpu.CompilerParams(
            dimension_semantics=("parallel",),
            vmem_limit_bytes=_VMEM_LIMIT_BYTES),
    )(*args)

    def unflatten(x):
        if needs_pad:
            return x.reshape(-1)[:n].reshape(B, A)
        return x.reshape(B, A)          # free metadata-only reshape

    new_supp = unflatten(outs[0])
    if return_increased:
        return new_supp, unflatten(outs[1])
    return new_supp


if __name__ == "__main__":
    key = jax.random.PRNGKey(0)
    NUM_EQUIP_STATES = 3
    REFILL_PROB = 0.6
    equipment_bonuses = jnp.array([0.0, -1.0, 1.0], jnp.float32)

    def make_inputs(k, B, A):
        k1, k2, k3, k4 = jax.random.split(k, 4)
        suppressants = jax.random.uniform(k1, (B, A), jnp.float32, 0.0, 2.0)
        capacity = jnp.full((B, A), 2.0, jnp.float32)
        equipment = jax.random.randint(k2, (B, A), 0, NUM_EQUIP_STATES, jnp.int32)
        refilled = jax.random.bernoulli(k3, 0.7, (B, A))
        randomness = jax.random.uniform(k4, (B, A), jnp.float32)
        return suppressants, capacity, equipment, refilled, randomness

    def check(B, A, *, stochastic, want_mask, force_pallas):
        k = jax.random.fold_in(key, B * 131 + A)
        supp, cap, equip, refill, rand = make_inputs(k, B, A)
        kwargs = dict(stochastic_refill=stochastic,
                      refill_probability=REFILL_PROB,
                      return_increased=want_mask)
        if force_pallas:
            kwargs["min_pallas_elements"] = 1
        out = suppressant_refill(supp, cap, equip, refill,
                                 rand if stochastic else None,
                                 equipment_bonuses, **kwargs)
        out = jax.block_until_ready(out)

        ref_bonus = equipment_bonuses[equip]
        ref_mask = refill
        if stochastic:
            ref_mask = jnp.logical_and(ref_mask, rand < REFILL_PROB)
        ref_supp = jnp.where(ref_mask, cap + ref_bonus, supp)

        if want_mask:
            new_supp, mask = out
            assert mask.dtype == jnp.bool_, mask.dtype
            assert jnp.array_equal(mask, ref_mask), f"mask mismatch ({B},{A})"
        else:
            new_supp = out
        assert new_supp.shape == (B, A)
        assert jnp.allclose(new_supp, ref_supp, atol=1e-6), f"supp mismatch ({B},{A})"

    # Pallas path (lane-aligned, >=2 parallel grid steps): stochastic + mask out.
    check(16, 256, stochastic=True, want_mask=True, force_pallas=True)
    # Pallas path: deterministic refill, no randomness stream / mask output.
    check(16, 256, stochastic=False, want_mask=False, force_pallas=True)
    # Pallas path with a ragged flat size (B*A % 128 != 0) -> pad fallback.
    check(10, 100, stochastic=True, want_mask=True, force_pallas=True)
    # Tiny problem at the module's nominal shape -> fast path (plain XLA fusion).
    check(2, 4, stochastic=True, want_mask=True, force_pallas=False)

    print("KERNEL_OK")
</pallas_src>

<mosaic_0001>
module attributes {stable_mosaic.version = 11 : i64} {
  func.func @kernel(%arg0: i32, %arg1: memref<3xf32, #tpu.memory_space<smem>>, %arg2: memref<16x128xf32, #tpu.memory_space<vmem>>, %arg3: memref<16x128xf32, #tpu.memory_space<vmem>>, %arg4: memref<16x128xi32, #tpu.memory_space<vmem>>, %arg5: memref<16x128xi32, #tpu.memory_space<vmem>>, %arg6: memref<16x128xf32, #tpu.memory_space<vmem>>, %arg7: memref<16x128xf32, #tpu.memory_space<vmem>>, %arg8: memref<16x128xi32, #tpu.memory_space<vmem>>) attributes {dimension_semantics = [#tpu.dimension_semantics<parallel>], iteration_bounds = array<i64: 2>, scalar_prefetch = 0 : i64, scratch_operands = 0 : i64, tpu.core_type = #tpu.core_type<tc>, window_params = [{transform_indices = @transform_0, window_bounds = array<i64: 3>}, {transform_indices = @transform_1, window_bounds = array<i64: 16, 128>}, {transform_indices = @transform_2, window_bounds = array<i64: 16, 128>}, {transform_indices = @transform_3, window_bounds = array<i64: 16, 128>}, {transform_indices = @transform_4, window_bounds = array<i64: 16, 128>}, {transform_indices = @transform_5, window_bounds = array<i64: 16, 128>}, {transform_indices = @transform_6, window_bounds = array<i64: 16, 128>}, {transform_indices = @transform_7, window_bounds = array<i64: 16, 128>}]} {
    %c0 = arith.constant 0 : index
    %c0_0 = arith.constant 0 : index
    %0 = vector.load %arg5[%c0, %c0_0] : memref<16x128xi32, #tpu.memory_space<vmem>>, vector<16x128xi32>
    %cst = arith.constant dense<0> : vector<16x128xi32>
    %1 = arith.cmpi ne, %0, %cst : vector<16x128xi32>
    %c0_1 = arith.constant 0 : index
    %c0_2 = arith.constant 0 : index
    %2 = vector.load %arg6[%c0_1, %c0_2] : memref<16x128xf32, #tpu.memory_space<vmem>>, vector<16x128xf32>
    %cst_3 = arith.constant 6.000000e-01 : f32
    %3 = vector.broadcast %cst_3 : f32 to vector<16x128xf32>
    %4 = arith.cmpf olt, %2, %3 : vector<16x128xf32>
    %5 = arith.andi %1, %4 : vector<16x128xi1>
    %c0_4 = arith.constant 0 : index
    %c0_5 = arith.constant 0 : index
    %6 = vector.load %arg4[%c0_4, %c0_5] : memref<16x128xi32, #tpu.memory_space<vmem>>, vector<16x128xi32>
    %c0_6 = arith.constant 0 : index
    %7 = memref.load %arg1[%c0_6] : memref<3xf32, #tpu.memory_space<smem>>
    %c1 = arith.constant 1 : index
    %8 = memref.load %arg1[%c1] : memref<3xf32, #tpu.memory_space<smem>>
    %c2 = arith.constant 2 : index
    %9 = memref.load %arg1[%c2] : memref<3xf32, #tpu.memory_space<smem>>
    %c0_i32 = arith.constant 0 : i32
    %10 = vector.broadcast %c0_i32 : i32 to vector<16x128xi32>
    %11 = arith.cmpi eq, %6, %10 : vector<16x128xi32>
    %cst_7 = arith.constant 0.000000e+00 : f32
    %12 = vector.broadcast %7 : f32 to vector<16x128xf32>
    %13 = vector.broadcast %cst_7 : f32 to vector<16x128xf32>
    %14 = arith.select %11, %12, %13 : vector<16x128xi1>, vector<16x128xf32>
    %c1_i32 = arith.constant 1 : i32
    %15 = vector.broadcast %c1_i32 : i32 to vector<16x128xi32>
    %16 = arith.cmpi eq, %6, %15 : vector<16x128xi32>
    %17 = vector.broadcast %8 : f32 to vector<16x128xf32>
    %18 = arith.select %16, %17, %14 : vector<16x128xi1>, vector<16x128xf32>
    %c2_i32 = arith.constant 2 : i32
    %19 = vector.broadcast %c2_i32 : i32 to vector<16x128xi32>
    %20 = arith.cmpi eq, %6, %19 : vector<16x128xi32>
    %21 = vector.broadcast %9 : f32 to vector<16x128xf32>
    %22 = arith.select %20, %21, %18 : vector<16x128xi1>, vector<16x128xf32>
    %c0_8 = arith.constant 0 : index
    %c0_9 = arith.constant 0 : index
    %23 = vector.load %arg3[%c0_8, %c0_9] : memref<16x128xf32, #tpu.memory_space<vmem>>, vector<16x128xf32>
    %24 = arith.addf %23, %22 : vector<16x128xf32>
    %c0_10 = arith.constant 0 : index
    %c0_11 = arith.constant 0 : index
    %25 = vector.load %arg2[%c0_10, %c0_11] : memref<16x128xf32, #tpu.memory_space<vmem>>, vector<16x128xf32>
    %26 = arith.select %5, %24, %25 : vector<16x128xi1>, vector<16x128xf32>
    %c0_12 = arith.constant 0 : index
    %c0_13 = arith.constant 0 : index
    %27 = vector.load %arg7[%c0_12, %c0_13] : memref<16x128xf32, #tpu.memory_space<vmem>>, vector<16x128xf32>
    tpu.vector_store %arg7[%c0_12, %c0_13], %26 {strides = array<i32>} : memref<16x128xf32, #tpu.memory_space<vmem>>, vector<16x128xf32>,
    %c0_14 = arith.constant 0 : index
    %c0_15 = arith.constant 0 : index
    %28 = vector.load %arg8[%c0_14, %c0_15] : memref<16x128xi32, #tpu.memory_space<vmem>>, vector<16x128xi32>
    %29 = arith.extui %5 : vector<16x128xi1> to vector<16x128xi32>
    %cst_16 = arith.constant dense<0> : vector<16x128xi32>
    %30 = arith.cmpi ne, %28, %cst_16 : vector<16x128xi32>
    tpu.vector_store %arg8[%c0_14, %c0_15], %29 {strides = array<i32>} : memref<16x128xi32, #tpu.memory_space<vmem>>, vector<16x128xi32>,
    return
  }
  func.func @transform_0(%arg0: i32) -> i32 {
    %c0_i32 = arith.constant 0 : i32
    %c0_i32_0 = arith.constant 0 : i32
    return %c0_i32 : i32
  }
  func.func @transform_1(%arg0: i32) -> (i32, i32) {
    %c0_i32 = arith.constant 0 : i32
    %c0_i32_0 = arith.constant 0 : i32
    return %arg0, %c0_i32 : i32, i32
  }
  func.func @transform_2(%arg0: i32) -> (i32, i32) {
    %c0_i32 = arith.constant 0 : i32
    %c0_i32_0 = arith.constant 0 : i32
    return %arg0, %c0_i32 : i32, i32
  }
  func.func @transform_3(%arg0: i32) -> (i32, i32) {
    %c0_i32 = arith.constant 0 : i32
    %c0_i32_0 = arith.constant 0 : i32
    return %arg0, %c0_i32 : i32, i32
  }
  func.func @transform_4(%arg0: i32) -> (i32, i32) {
    %c0_i32 = arith.constant 0 : i32
    %c0_i32_0 = arith.constant 0 : i32
    return %arg0, %c0_i32 : i32, i32
  }
  func.func @transform_5(%arg0: i32) -> (i32, i32) {
    %c0_i32 = arith.constant 0 : i32
    %c0_i32_0 = arith.constant 0 : i32
    return %arg0, %c0_i32 : i32, i32
  }
  func.func @transform_6(%arg0: i32) -> (i32, i32) {
    %c0_i32 = arith.constant 0 : i32
    %c0_i32_0 = arith.constant 0 : i32
    return %arg0, %c0_i32 : i32, i32
  }
  func.func @transform_7(%arg0: i32) -> (i32, i32) {
    %c0_i32 = arith.constant 0 : i32
    %c0_i32_0 = arith.constant 0 : i32
    return %arg0, %c0_i32 : i32, i32
  }
}

</mosaic_0001>

<bundles_post_ra>
// kernel: suppressant_refill.1
= control target key start
LH: loop header
LB: loop body
LE: loop exit
PB: predicated region body
PF: predicated region fallthrough
CT: control target
= control target key end

     0   :  { %13 = vsyncpa [#allocation3], 0  ;;  %s706_s24 = smov 0   ;;  %s783_s0 = inlined_call_operand.vmem [shape: f32[3], index: 0, kind: input, shape index: {}]   ;;  %s784_s1 = inlined_call_operand.vmem [shape: f32[32,128], index: 1, kind: input, shape index: {}]   ;;  %s785_s2 = inlined_call_operand.vmem [shape: f32[32,128], index: 2, kind: input, shape index: {}]   ;;  %s786_s3 = inlined_call_operand.vmem [shape: s32[32,128], index: 3, kind: input, shape index: {}]   ;;  %s787_s4 = inlined_call_operand.vmem [shape: s32[32,128], index: 4, kind: input, shape index: {}]   ;;  %s788_s5 = inlined_call_operand.vmem [shape: f32[32,128], index: 5, kind: input, shape index: {}]   ;;  %s789_s6 = inlined_call_operand.vmem [shape: f32[32,128], index: 6, kind: output, shape index: {0}]   ;;  %s790_s7 = inlined_call_operand.vmem [shape: s32[32,128], index: 7, kind: output, shape index: {1}]  }
   0x1 LB: > { %s592_s25 = sadd.s32 4294967295, %s662_s24   ;;  %p594_p0 = scmp.ge.s32.totalorder %s662_s24, 1  ;;  %s662_s24 = sphi %s706_s24, %s19_s24  }
   0x2   : > { %p227_p1 = scmp.lt.s32.totalorder %s662_s24, 3  ;;  %s239_s28 = sshll.u32 %s783_s0, 4  ;;  %s240_s28 = int_to_ptr.vmem [resolvable:$true] %s239_s28 }
   0x3   : > { %p625_p3 = scmp.eq.s32.totalorder %s592_s25, 0  ;;  %s664_s29 = smov [#allocation2]  }
   0x4   : > { %p228_p2 = pnand %p594_p0, %p227_p1 }
   0x6   : > { %p621_p4 = pneg %p228_p2  ;;  %297 = sbr.rel (%p228_p2) target bundleno = 31 (0x1f), region = 44 }
   0x8   : > { %p622_p5 = pnand %p625_p3, %p621_p4 }
   0xa   : > { %624 = dma.vmem_to_smem (!%p622_p5), %s240_s28, 16, %s664_s29, [#allocation3]  }
   0xb   : > { %657 = dma.done.wait (%p625_p3), [#allocation3], 16  }
   0xc   : > { %659 = vsyncadd (%p625_p3), [#allocation3], 4294967280 }
   0xd   : > { %304 = sfence }
   0xe   : > { %s599_s30 = sshll.u32 %s592_s25, 1  ;;  %s717_s8 = sld [smem:[#allocation2]]  ;;  %v665_v15 = vmov 0  }
   0xf   : > { %p357_p6 = scmp.lt.s32.totalorder %s599_s30, 3  ;;  %s719_s9 = sld [smem:[#allocation2 + $0x1]] }
  0x10   : > { %s721_s10 = sld [smem:[#allocation2 + $0x2]] }
  0x11   : > { %s796_s30 = smov (!%p357_p6, %s599_s30), 3 }
  0x12   : > { %s723_s11 = sshll.u32 %s796_s30, 3 }
  0x13   : > { %s729_s14 = scalar_lea.vmem %s785_s2, %s723_s11  ;;  %s372_s17 = scalar_lea.vmem %s786_s3, %s723_s11 }
  0x14   : > { %s378_s20 = scalar_lea.vmem %s787_s4, %s723_s11  ;;  %v415_v0 = vstv %s717_s8  ;;  %s384_s23 = scalar_lea.vmem %s788_s5, %s723_s11  ;;  %v408_v3 = vld [vmem:[%s372_s17] sm:$0xff]  ;;  %v409_v12 = vld [vmem:[%s372_s17 + $0x8] sm:$0xff] }
  0x15   : > { %v420_v1 = vstv %s719_s9  ;;  %v398_v2 = vld [vmem:[%s378_s20] sm:$0xff]  ;;  %v399_v6 = vld [vmem:[%s378_s20 + $0x8] sm:$0xff]  ;;  %s751_s27 = scalar_lea.vmem %s784_s1, %s723_s11  ;;  %vm413_vm1 = vcmp.eq.s32.totalorder %v408_v3, 0  ;;  %vm418_vm2 = vcmp.eq.s32.totalorder %v408_v3, 1  ;;  %vm423_vm3 = vcmp.eq.s32.totalorder %v408_v3, 2  ;;  %s396_s30 = scalar_lea.vmem %s790_s7, %s723_s11 }
  0x16   : > { %v425_v4 = vstv %s721_s10  ;;  %v428_v5 = vld [vmem:[%s729_s14] sm:$0xff]  ;;  %vm400_vm0 = vcmp.ne.s32.totalorder %v398_v2, 0  ;;  %v403_v8 = vld [vmem:[%s384_s23 + $0x8] sm:$0xff]  ;;  %v416_v9 = vsel %vm413_vm1, %v415_v0, 0.0  ;;  %vm401_vm5 = vcmp.ne.s32.totalorder %v399_v6, 0  ;;  %s390_s10 = scalar_lea.vmem %s789_s6, %s723_s11 }
  0x17   : > { %v402_v7 = vld [vmem:[%s384_s23] sm:$0xff]  ;;  %vm405_vm6 = vcmp.lt.f32.partialorder %v403_v8, 0.6  ;;  %v421_v11 = vsel %vm418_vm2, %v420_v1, %v416_v9  ;;  %vm414_vm9 = vcmp.eq.s32.totalorder %v409_v12, 0  ;;  %vm419_vm10 = vcmp.eq.s32.totalorder %v409_v12, 1  ;;  %v429_v20 = vld [vmem:[%s729_s14 + $0x8] sm:$0xff] }
  0x18   : > { %vm404_vm4 = vcmp.lt.f32.partialorder %v402_v7, 0.6  ;;  %v426_v13 = vsel %vm423_vm3, %v425_v4, %v421_v11  ;;  %v432_v14 = vld [vmem:[%s751_s27] sm:$0xff]  ;;  %vm764_vm8 = vmand %vm401_vm5, %vm405_vm6  ;;  %v417_v19 = vsel %vm414_vm9, %v415_v0, 0.0  ;;  %vm424_vm11 = vcmp.eq.s32.totalorder %v409_v12, 2  ;;  %v433_v25 = vld [vmem:[%s751_s27 + $0x8] sm:$0xff] }
  0x19   : > { %vm757_vm7 = vmand %vm400_vm0, %vm404_vm4  ;;  %v430_v18 = vadd.f32 %v428_v5, %v426_v13  ;;  %v439_v21 = vsel %vm764_vm8, 1, %v665_v15  ;;  %v422_v22 = vsel %vm419_vm10, %v420_v1, %v417_v19 }
  0x1a   : > { %v438_v16 = vsel %vm757_vm7, 1, %v665_v15  ;;  %441 = vst [vmem:[%s396_s30 + $0x8] sm:$0xff] %v439_v21  ;;  %v427_v24 = vsel %vm424_vm11, %v425_v4, %v422_v22 }
  0x1b   : > { %440 = vst [vmem:[%s396_s30] sm:$0xff] %v438_v16  ;;  %v434_v23 = vsel %vm757_vm7, %v430_v18, %v432_v14  ;;  %v431_v26 = vadd.f32 %v429_v20, %v427_v24 }
  0x1c   : > { %436 = vst [vmem:[%s390_s10] sm:$0xff] %v434_v23 }
  0x1d   : > { %v435_v27 = vsel %vm764_vm8, %v431_v26, %v433_v25 }
  0x1e   : > { %437 = vst [vmem:[%s390_s10 + $0x8] sm:$0xff] %v435_v27 }
  0x1f PF: > { %s19_s24 = sadd.s32 1, %s662_s24  }
  0x20   : > { %p16_p7 = scmp.ge.s32.totalorder %s19_s24, 4  }
  0x22   :  { %18 = sbr.rel (!%p16_p7) target bundleno = 1 (0x1), region = 103 }
  0x27   :  { %481 = vsyncpa [#allocation3], 1 }
  0x28   :  { %483 = vsyncpa [#allocation3 + $0x1], 1 }

</bundles_post_ra>
